<compile_context>
chip_gen: v7x
topology: tpu7x:2x2x1
jax: 0.10.0
libtpu: 0.0.40
codegen_flags: <defaults>
</compile_context>

<pallas_src>
import jax
import jax.numpy as jnp
from jax import lax
from jax.experimental import pallas as pl
from jax.experimental.pallas import tpu as pltpu


# ---------------------------------------------------------------------------
# Kernel 1: stand-in CNN backbone = im2col conv (3x3, pad 1) + ReLU + GAP
# Single grid step: one bf16 matmul over all B*H*W rows, segmented mean,
# one (B, Cout) bf16 store.
# ---------------------------------------------------------------------------
def _conv_gap_kernel(p_ref, w_ref, b_ref, o_ref):
    # p_ref: (B*H*W, 9*Cin) bf16 im2col patches (all batch rows)
    # w_ref: (9*Cin, Cout)  bf16 reshaped conv weights
    # b_ref: (1, Cout)      f32 conv bias
    # o_ref: (B, Cout)      bf16 pooled features
    B, Cout = o_ref.shape
    HW = p_ref.shape[0] // B
    acc = jnp.dot(p_ref[...], w_ref[...],
                  preferred_element_type=jnp.float32)      # one MXU push
    acc = jnp.maximum(acc + b_ref[...], 0.0)               # ReLU
    # Segmented global-average-pool: layout-preserving reshape (HW % 8 == 0)
    # then one sublane reduction per batch slab.
    pooled = jnp.mean(acc.reshape(B, HW, Cout), axis=1)    # (B, Cout) f32
    o_ref[...] = pooled.astype(o_ref.dtype)                # single store


def conv_gap(x_nhwc, conv_w, conv_b):
    B, H, W, Cin = x_nhwc.shape
    KH, KW, _, Cout = conv_w.shape
    x_pad = jnp.pad(x_nhwc, ((0, 0), (1, 1), (1, 1), (0, 0)))
    # TODO(synk): at realistic CNN sizes fold the im2col into the kernel
    # (9 shifted-window matmul accumulations) instead of materializing the
    # 9x-amplified patches tensor through HBM in the wrapper.
    cols = [x_pad[:, kh:kh + H, kw:kw + W, :]
            for kh in range(KH) for kw in range(KW)]
    patches = (jnp.concatenate(cols, axis=-1)
               .reshape(B * H * W, KH * KW * Cin)
               .astype(jnp.bfloat16))                      # bf16 MXU operand
    w2 = conv_w.reshape(KH * KW * Cin, Cout).astype(jnp.bfloat16)
    return pl.pallas_call(
        _conv_gap_kernel,
        out_shape=jax.ShapeDtypeStruct((B, Cout), jnp.bfloat16),
        grid=(1,),
        in_specs=[
            pl.BlockSpec((B * H * W, KH * KW * Cin), lambda i: (0, 0)),
            pl.BlockSpec((KH * KW * Cin, Cout), lambda i: (0, 0)),
            pl.BlockSpec((1, Cout), lambda i: (0, 0)),
        ],
        out_specs=pl.BlockSpec((B, Cout), lambda i: (0, 0)),
        compiler_params=pltpu.CompilerParams(
            dimension_semantics=("arbitrary",)),
    )(patches, w2, conv_b)


# ---------------------------------------------------------------------------
# Kernel 2: fused  prj_cnn  +  (per-iteration: multi-layer LSTM over the full
# sequence with carried hidden, prj_rnn on the t==0 output, add cnn feats,
# tied-weight fc, argmax) -> int32 tag ids (B, num_iters)
# ---------------------------------------------------------------------------
def _rnn_fused_kernel(embed_ref, cnn_ref, wpc_ref, bpc_ref,
                      wih_ref, whh_ref, blstm_ref, wpr_ref, bpr_ref,
                      embt_ref, bfc_ref, out_ref, h_sc, c_sc):
    TB, E = embed_ref.shape
    L, Bc, H = h_sc.shape
    T = TB // Bc
    V = embt_ref.shape[1]
    num_iters = out_ref.shape[1]

    # hidden = None  ->  zero-initialized LSTM state (carried across iters)
    h_sc[...] = jnp.zeros_like(h_sc)
    c_sc[...] = jnp.zeros_like(c_sc)

    # ---- Hoisted loop invariants (JAX does not CSE broadcast_in_dim) ----
    # prj_cnn with both projection biases folded in, computed once.
    base = (jnp.dot(cnn_ref[...], wpc_ref[...],
                    preferred_element_type=jnp.float32)
            + bpc_ref[...] + bpr_ref[...])                       # (B, E)
    # cuDNN-style hoist: layer-0 input projection for ALL timesteps as ONE
    # well-shaped (T*B, E) @ (E, 4H) matmul, layer-0 bias folded in.  The
    # recurrence then only needs h @ W_hh (K = H) per step for layer 0.
    x0_gates = (jnp.dot(embed_ref[...], wih_ref[0],
                        preferred_element_type=jnp.float32)
                + blstm_ref[0])                                  # (T*B, 4H)
    lstm_bias = [jnp.broadcast_to(blstm_ref[l], (Bc, 4 * H))
                 for l in range(1, L)]                           # tiny, hoisted

    def lstm_cell(l, gates):
        # PyTorch gate order: i, f, g, o.
        i_g = jax.nn.sigmoid(gates[:, 0:H])
        f_g = jax.nn.sigmoid(gates[:, H:2 * H])
        g_g = jnp.tanh(gates[:, 2 * H:3 * H])
        o_g = jax.nn.sigmoid(gates[:, 3 * H:4 * H])
        c_new = f_g * c_sc[l] + i_g * g_g
        h_new = o_g * jnp.tanh(c_new)
        c_sc[l] = c_new
        h_sc[l] = h_new
        return h_new

    def lstm_step(t):
        # Layer 0: hoisted input projection slice + recurrent matmul only.
        gates = (x0_gates[t * Bc:(t + 1) * Bc]
                 + jnp.dot(h_sc[0].astype(jnp.bfloat16), whh_ref[0],
                           preferred_element_type=jnp.float32))
        h_new = lstm_cell(0, gates)
        x = h_new.astype(jnp.bfloat16)
        # Layers > 0: no per-step lane-dim concat -- two MXU pushes per layer.
        for l in range(1, L):
            gates = (jnp.dot(x, wih_ref[l], preferred_element_type=jnp.float32)
                     + jnp.dot(h_sc[l].astype(jnp.bfloat16), whh_ref[l],
                               preferred_element_type=jnp.float32)
                     + lstm_bias[l - 1])
            h_new = lstm_cell(l, gates)
            x = h_new.astype(jnp.bfloat16)
        return h_new                                             # (B, H) f32

    # num_iters (= batch size) and T*L are tiny and static -> fully unrolled.
    # TODO(synk): at realistic sizes (vocab >= 32K, E >= 512) turn the outer
    # iteration into a fori_loop / grid axis; stream the (E, V) tied weight
    # over vocab tiles with a running (max, argmax) carried in VMEM and the
    # vocab axis marked "parallel" (mandatory on v7x's 64 MiB VMEM, uses the
    # 2nd TensorCore); on v5e/v6e keep it VMEM-resident and single-buffered
    # (pipeline_mode=pl.Buffered(1) on the constant-index full blocks, raise
    # vmem_limit_bytes past the 16/32 MiB scoped defaults); consider a
    # layer/time wavefront to overlap MXU and EUP across layers.
    pred_cols = []
    for it in range(num_iters):
        h0 = lstm_step(0)                     # last-layer output at t == 0

        # Issue the wide logits matmul BEFORE the sequential tail below: it
        # only depends on h0, so the LLO scheduler can overlap it with the
        # recurrence.
        rnn_out = jnp.dot(h0.astype(jnp.bfloat16), wpr_ref[...],
                          preferred_element_type=jnp.float32)
        fuse = base + rnn_out                                     # (B, E)
        # Tied fc weight: emb pre-transposed once in the wrapper to (E, V) ->
        # clean (K=E, N=V) MXU layout, lane-dense V output, no in-kernel
        # relayout; (1, V) bias added directly (never materialized as (B,V)).
        logits = (jnp.dot(fuse.astype(jnp.bfloat16), embt_ref[...],
                          preferred_element_type=jnp.float32)
                  + bfc_ref[...])                                 # (B, V)

        # argmax over vocab (first max index, like torch .max(1)[1]).
        # TODO(synk): becomes a running max/argmax carried across vocab tiles
        # once V is streamed (see realistic-size TODO above).
        mx = jnp.max(logits, axis=1, keepdims=True)
        vidx = lax.broadcasted_iota(jnp.int32, logits.shape, 1)
        pred_cols.append(jnp.min(jnp.where(logits >= mx, vidx, V),
                                 axis=1, keepdims=True).astype(jnp.int32))

        if it + 1 < num_iters:
            # Advance the carried hidden state over the rest of the sequence.
            # (The state produced by the final iteration is never consumed,
            # so its tail is skipped at trace time.)
            for t in range(1, T):
                lstm_step(t)

    # Single lane-contiguous store of all predictions (no per-iteration RMW,
    # no zero-init of the output).
    out_ref[...] = jnp.concatenate(pred_cols, axis=1)


def _full_spec(shape):
    rank = len(shape)
    return pl.BlockSpec(shape, lambda i, _r=rank: (0,) * _r)


def rnn_fused(embed_flat, cnn_feats, wpc, bpc, wih, whh, blstm, wpr, bpr,
              emb_t, bfc, num_iters):
    TB, E = embed_flat.shape
    B, Ccnn = cnn_feats.shape
    T = TB // B
    L = wih.shape[0]
    H = whh.shape[1]
    V = emb_t.shape[1]
    args = (embed_flat, cnn_feats, wpc, bpc, wih, whh, blstm, wpr, bpr,
            emb_t, bfc)

    # Cost hint so XLA schedules the conv / embedding gather around this
    # (the kernel looks tiny from outside but runs many dependent matmuls).
    steps = num_iters + (num_iters - 1) * (T - 1)            # LSTM timesteps
    flops = (2 * TB * E * 4 * H                              # hoisted layer-0
             + steps * 2 * B * H * 4 * H                     # layer-0 h@Whh
             + steps * (L - 1) * 2 * B * (E + H) * 4 * H     # layers > 0
             + num_iters * 2 * B * H * E                     # prj_rnn
             + num_iters * 2 * B * E * V                     # tied fc logits
             + 2 * B * Ccnn * E)                             # prj_cnn
    transcendentals = steps * L * B * 5 * H                  # 4 gates + tanh(c)
    bytes_accessed = (sum(int(a.size) * a.dtype.itemsize for a in args)
                      + B * num_iters * 4)

    return pl.pallas_call(
        _rnn_fused_kernel,
        out_shape=jax.ShapeDtypeStruct((B, num_iters), jnp.int32),
        grid=(1,),
        in_specs=[_full_spec(a.shape) for a in args],
        out_specs=_full_spec((B, num_iters)),
        scratch_shapes=[pltpu.VMEM((L, B, H), jnp.float32),
                        pltpu.VMEM((L, B, H), jnp.float32)],
        compiler_params=pltpu.CompilerParams(
            dimension_semantics=("arbitrary",)),
        cost_estimate=pl.CostEstimate(
            flops=int(flops), transcendentals=int(transcendentals),
            bytes_accessed=int(bytes_accessed)),
    )(*args)


# ---------------------------------------------------------------------------
# Parameter init (deterministic, synthetic) + forward wrapper
# ---------------------------------------------------------------------------
def init_params(key, *, vocab_size, embed_dim, num_layers,
                num_feats_cnn, in_channels):
    H = embed_dim
    ks = jax.random.split(key, 8)
    s = 0.1
    p = {
        "conv_w": jax.random.normal(
            ks[0], (3, 3, in_channels, num_feats_cnn), jnp.float32) * s,
        "conv_b": jnp.zeros((1, num_feats_cnn), jnp.float32),
        # embedding weight is shared with fc (tied weights)
        "emb": jax.random.normal(
            ks[1], (vocab_size, embed_dim), jnp.float32) * s,
        "wih": jax.random.normal(
            ks[2], (num_layers, embed_dim, 4 * H), jnp.float32) * s,
        "whh": jax.random.normal(
            ks[3], (num_layers, H, 4 * H), jnp.float32) * s,
        "blstm": jax.random.normal(
            ks[4], (num_layers, 1, 4 * H), jnp.float32) * s,   # b_ih + b_hh
        "wpc": jax.random.normal(
            ks[5], (num_feats_cnn, embed_dim), jnp.float32) * s,
        "bpc": jnp.zeros((1, embed_dim), jnp.float32),
        "wpr": jax.random.normal(
            ks[6], (H, embed_dim), jnp.float32) * s,
        "bpr": jnp.zeros((1, embed_dim), jnp.float32),
        "bfc": jnp.zeros((1, vocab_size), jnp.float32),
    }
    return p


def forward(params, img_nchw, tags, lengths=None):
    # img_nchw: (B, Cin, H, W) float32; tags: (B, T) int32; lengths unused
    x_nhwc = jnp.transpose(img_nchw, (0, 2, 3, 1)).astype(jnp.float32)
    cnn_feats = conv_gap(x_nhwc, params["conv_w"], params["conv_b"])  # (B,C) bf16

    emb_bf16 = params["emb"].astype(jnp.bfloat16)        # (V, E), tied with fc
    # Time-major flat embedding (T*B, E): row t*B + b, so the kernel's hoisted
    # layer-0 projection can slice each timestep's B rows contiguously.
    embed_flat = jnp.take(emb_bf16, jnp.transpose(tags).reshape(-1), axis=0)
    # Tied fc weight consumed as (K=E, N=V): one-time wrapper transpose.
    emb_t = jnp.transpose(emb_bf16)                      # (E, V)

    wih = params["wih"].astype(jnp.bfloat16)             # (L, E, 4H)
    whh = params["whh"].astype(jnp.bfloat16)             # (L, H, 4H)
    wpc = params["wpc"].astype(jnp.bfloat16)
    wpr = params["wpr"].astype(jnp.bfloat16)

    num_iters = tags.shape[0]                            # `for _ in tags:` -> B
    tag_ids = rnn_fused(embed_flat, cnn_feats, wpc, params["bpc"],
                        wih, whh, params["blstm"], wpr, params["bpr"],
                        emb_t, params["bfc"], num_iters)  # (B, num_iters)
    return jnp.squeeze(tag_ids)


if __name__ == "__main__":
    B, Cin, Himg, Wimg = 2, 4, 16, 16
    T = 8
    vocab_size, embed_dim, num_rnn_layers = 64, 32, 2
    num_feats_cnn = 64   # stand-in for resnet50 fc.in_features (2048)

    root = jax.random.PRNGKey(0)
    k_params, k_img, k_tags = jax.random.split(root, 3)

    params = init_params(k_params, vocab_size=vocab_size, embed_dim=embed_dim,
                         num_layers=num_rnn_layers,
                         num_feats_cnn=num_feats_cnn, in_channels=Cin)

    img = jax.random.normal(k_img, (B, Cin, Himg, Wimg), jnp.float32)
    tags = jax.random.randint(k_tags, (B, T), 0, vocab_size, dtype=jnp.int32)
    lengths = jnp.full((B,), T, dtype=jnp.int32)

    out = forward(params, img, tags, lengths)
    jax.block_until_ready(out)
    print("KERNEL_OK")
</pallas_src>

<mosaic_0001>
module attributes {stable_mosaic.version = 11 : i64} {
  func.func @_conv_gap_kernel(%arg0: i32, %arg1: memref<512x36xbf16, #tpu.memory_space<vmem>>, %arg2: memref<36x64xbf16, #tpu.memory_space<vmem>>, %arg3: memref<1x64xf32, #tpu.memory_space<vmem>>, %arg4: memref<2x64xbf16, #tpu.memory_space<vmem>>) attributes {dimension_semantics = [#tpu.dimension_semantics<arbitrary>], iteration_bounds = array<i64: 1>, scalar_prefetch = 0 : i64, scratch_operands = 0 : i64, tpu.core_type = #tpu.core_type<tc>, window_params = [{pipeline_mode = #tpu.pipeline_mode<synchronous>, transform_indices = @transform_0, window_bounds = array<i64: 512, 36>}, {pipeline_mode = #tpu.pipeline_mode<synchronous>, transform_indices = @transform_1, window_bounds = array<i64: 36, 64>}, {pipeline_mode = #tpu.pipeline_mode<synchronous>, transform_indices = @transform_2, window_bounds = array<i64: 1, 64>}, {pipeline_mode = #tpu.pipeline_mode<synchronous>, transform_indices = @transform_3, window_bounds = array<i64: 2, 64>}]} {
    %c0 = arith.constant 0 : index
    %c0_0 = arith.constant 0 : index
    %0 = vector.load %arg1[%c0, %c0_0] : memref<512x36xbf16, #tpu.memory_space<vmem>>, vector<512x36xbf16>
    %c0_1 = arith.constant 0 : index
    %c0_2 = arith.constant 0 : index
    %1 = vector.load %arg2[%c0_1, %c0_2] : memref<36x64xbf16, #tpu.memory_space<vmem>>, vector<36x64xbf16>
    %cst = arith.constant dense<0.000000e+00> : vector<512x64xf32>
    %2 = tpu.matmul %0, %1, %cst {dimension_numbers = #tpu.dot_dimension_numbers<[1], [0], [0], [1], [0, 0, 1, 1], [], []>} : vector<512x36xbf16>, vector<36x64xbf16>, vector<512x64xf32> -> vector<512x64xf32>
    %c0_3 = arith.constant 0 : index
    %c0_4 = arith.constant 0 : index
    %3 = vector.load %arg3[%c0_3, %c0_4] : memref<1x64xf32, #tpu.memory_space<vmem>>, vector<1x64xf32>
    %4 = vector.broadcast %3 : vector<1x64xf32> to vector<512x64xf32>
    %5 = arith.addf %2, %4 : vector<512x64xf32>
    %cst_5 = arith.constant 0.000000e+00 : f32
    %6 = vector.broadcast %cst_5 : f32 to vector<512x64xf32>
    %7 = arith.maximumf %5, %6 : vector<512x64xf32>
    %8 = vector.shape_cast %7 : vector<512x64xf32> to vector<2x256x64xf32>
    %cst_6 = arith.constant dense<0.000000e+00> : vector<2x64xf32>
    %9 = vector.multi_reduction <add>, %8, %cst_6 [1] : vector<2x256x64xf32> to vector<2x64xf32>
    %cst_7 = arith.constant 2.560000e+02 : f32
    %10 = vector.broadcast %cst_7 : f32 to vector<2x64xf32>
    %11 = arith.divf %9, %10 : vector<2x64xf32>
    %12 = arith.truncf %11 : vector<2x64xf32> to vector<2x64xbf16>
    %c0_8 = arith.constant 0 : index
    %c0_9 = arith.constant 0 : index
    %13 = vector.load %arg4[%c0_8, %c0_9] : memref<2x64xbf16, #tpu.memory_space<vmem>>, vector<2x64xbf16>
    tpu.vector_store %arg4[%c0_8, %c0_9], %12 {strides = array<i32>} : memref<2x64xbf16, #tpu.memory_space<vmem>>, vector<2x64xbf16>,
    return
  }
  func.func @transform_0(%arg0: i32) -> (i32, i32) {
    %c0_i32 = arith.constant 0 : i32
    %c0_i32_0 = arith.constant 0 : i32
    %c0_i32_1 = arith.constant 0 : i32
    return %c0_i32, %c0_i32_0 : i32, i32
  }
  func.func @transform_1(%arg0: i32) -> (i32, i32) {
    %c0_i32 = arith.constant 0 : i32
    %c0_i32_0 = arith.constant 0 : i32
    %c0_i32_1 = arith.constant 0 : i32
    return %c0_i32, %c0_i32_0 : i32, i32
  }
  func.func @transform_2(%arg0: i32) -> (i32, i32) {
    %c0_i32 = arith.constant 0 : i32
    %c0_i32_0 = arith.constant 0 : i32
    %c0_i32_1 = arith.constant 0 : i32
    return %c0_i32, %c0_i32_0 : i32, i32
  }
  func.func @transform_3(%arg0: i32) -> (i32, i32) {
    %c0_i32 = arith.constant 0 : i32
    %c0_i32_0 = arith.constant 0 : i32
    %c0_i32_1 = arith.constant 0 : i32
    return %c0_i32, %c0_i32_0 : i32, i32
  }
}

</mosaic_0001>

<bundles_post_ra>
// kernel: tpu_custom_call.1
= control target key start
LH: loop header
LB: loop body
LE: loop exit
PB: predicated region body
PF: predicated region fallthrough
CT: control target
= control target key end

     0   :  { %vm267_vm0 = vcmask 293888   ;;  %vm364_vm1 = vcmask 1041408   ;;  %s1514_s0 = inlined_call_operand.vmem [shape: bf16[512,36], index: 0, kind: input, shape index: {}]   ;;  %s1515_s1 = inlined_call_operand.vmem [shape: bf16[36,64], index: 1, kind: input, shape index: {}]   ;;  %s1516_s2 = inlined_call_operand.vmem [shape: f32[1,64], index: 2, kind: input, shape index: {}]   ;;  %s1517_s3 = inlined_call_operand.hbm [shape: bf16[2,64], index: 3, kind: output, shape index: {}]  }
   0x1   :  { %v1144_v0 = vld [vmem:[%s1515_s1] sm:$0xff]   ;;  %v1145_v1 = vld [vmem:[%s1515_s1 + $0x8] sm:$0xff]   ;;  %v1146_v2 = vld [vmem:[%s1515_s1 + $0x10] ss:$0 sps:$4 sm:$0x33]  }
   0x2   :  { %1063 = vmatprep.subr.bf16.mxu0 %v1144_v0  ;;  %1133 = vmatprep.subr.bf16.mxu1 %v1144_v0  ;;  %v1147_v3 = vld [vmem:[%s1514_s0] sm:$0xff]   ;;  %v366_v5 = vsel %vm364_vm1, %v1146_v2, 0  ;;  %v1149_v6 = vld [vmem:[%s1514_s0 + $0x8] sm:$0xff]   ;;  %v1151_v8 = vld [vmem:[%s1514_s0 + $0x10] sm:$0xff]  }
   0x3   :  { %1064 = vmatpush3.bf16.msra.mxu0 %v1144_v0  ;;  %1136 = vmatpush3.bf16.msra.mxu1 %v1144_v0  ;;  %v1148_v4 = vld [vmem:[%s1514_s0 + $0x80] sm:$0xff]   ;;  %v1150_v7 = vld [vmem:[%s1514_s0 + $0x88] sm:$0xff]   ;;  %v1152_v9 = vld [vmem:[%s1514_s0 + $0x90] sm:$0xff]  }
   0x4   :  { %1065 = vmatprep.subr.bf16.mxu0 %v1145_v1  ;;  %1134 = vmatprep.subr.bf16.mxu1 %v1145_v1  ;;  %v1153_v10 = vld [vmem:[%s1514_s0 + $0x18] sm:$0xff]   ;;  %v1155_v12 = vld [vmem:[%s1514_s0 + $0x20] sm:$0xff]   ;;  %v1157_v14 = vld [vmem:[%s1514_s0 + $0x28] sm:$0xff]  }
   0x5   :  { %1069 = vmatprep.mubr.msk.bf16.mxu0 %vm267_vm0, %v1147_v3  ;;  %1101 = vmatprep.mubr.msk.bf16.mxu1 %vm267_vm0, %v1148_v4  ;;  %v1154_v11 = vld [vmem:[%s1514_s0 + $0x98] sm:$0xff]   ;;  %v1156_v13 = vld [vmem:[%s1514_s0 + $0xa0] sm:$0xff]   ;;  %v1158_v15 = vld [vmem:[%s1514_s0 + $0xa8] sm:$0xff]  }
   0x6   :  { %v1159_v16 = vld [vmem:[%s1514_s0 + $0x30] sm:$0xff]   ;;  %v1161_v18 = vld [vmem:[%s1514_s0 + $0x38] sm:$0xff]  }
   0x7   :  { %1066 = vmatpush3.bf16.msra.mxu0 %v1145_v1  ;;  %1137 = vmatpush3.bf16.msra.mxu1 %v1145_v1  ;;  %v1160_v17 = vld [vmem:[%s1514_s0 + $0xb0] sm:$0xff]   ;;  %v1162_v19 = vld [vmem:[%s1514_s0 + $0xb8] sm:$0xff]  }
   0x8   :  { %1139 = vmatprep.subr.msk.bf16.mxu0 %vm364_vm1, %v1146_v2  ;;  %1140 = vmatprep.subr.msk.bf16.mxu1 %vm364_vm1, %v1146_v2 }
   0xb   :  { %1068 = vmatpush3.bf16.msra.mxu0 %v366_v5  ;;  %1138 = vmatpush3.bf16.msra.mxu1 %v366_v5 }
   0xe   :  { %1070 = vmatmul.mubr.msk.bf16.vlgmr.msra.gmra.mrb[0].mxu0 %vm267_vm0, %v1149_v6  ;;  %1102 = vmatmul.mubr.msk.bf16.vlgmr.msra.gmra.mrb[0].mxu1 %vm267_vm0, %v1150_v7 }
   0xf   :  { %1073 = vmatprep.mubr.msk.bf16.mxu0 %vm267_vm0, %v1151_v8  ;;  %1105 = vmatprep.mubr.msk.bf16.mxu1 %vm267_vm0, %v1152_v9 }
  0x16   :  { %1074 = vmatmul.mubr.msk.bf16.gmra.mrb[4].mxu0 %vm267_vm0, %v1153_v10  ;;  %1106 = vmatmul.mubr.msk.bf16.gmra.mrb[4].mxu1 %vm267_vm0, %v1154_v11 }
  0x17   :  { %1077 = vmatprep.mubr.msk.bf16.mxu0 %vm267_vm0, %v1155_v12  ;;  %1109 = vmatprep.mubr.msk.bf16.mxu1 %vm267_vm0, %v1156_v13 }
  0x1e   :  { %1078 = vmatmul.mubr.msk.bf16.gmra.mrb[8].mxu0 %vm267_vm0, %v1157_v14  ;;  %1110 = vmatmul.mubr.msk.bf16.gmra.mrb[8].mxu1 %vm267_vm0, %v1158_v15 }
  0x1f   :  { %1081 = vmatprep.mubr.msk.bf16.mxu0 %vm267_vm0, %v1159_v16  ;;  %1113 = vmatprep.mubr.msk.bf16.mxu1 %vm267_vm0, %v1160_v17 }
  0x20   :  { %8 = vsyncpa [#allocation3], 0  ;;  %v1163_v20 = vld [vmem:[%s1514_s0 + $0x40] sm:$0xff]   ;;  %v1165_v22 = vld [vmem:[%s1514_s0 + $0x48] sm:$0xff]   ;;  %vm721_vm2 = vcmask 523264   ;;  %vm926_vm3 = vcmask 1041409  }
  0x21   :  { %v1164_v21 = vld [vmem:[%s1514_s0 + $0xc0] sm:$0xff]   ;;  %v1166_v23 = vld [vmem:[%s1514_s0 + $0xc8] sm:$0xff]   ;;  %v1167_v24 = vld [vmem:[%s1514_s0 + $0x50] sm:$0xff]   ;;  %vm944_vm4 = vcmask 516096  }
  0x22   :  { %v1168_v25 = vld [vmem:[%s1514_s0 + $0xd0] sm:$0xff]   ;;  %v1169_v26 = vld [vmem:[%s1514_s0 + $0x58] sm:$0xff]   ;;  %v1171_v28 = vld [vmem:[%s1514_s0 + $0x60] sm:$0xff]  }
  0x23   :  { %v1170_v27 = vld [vmem:[%s1514_s0 + $0xd8] sm:$0xff]   ;;  %v1172_v29 = vld [vmem:[%s1514_s0 + $0xe0] sm:$0xff]   ;;  %v1173_v30 = vld [vmem:[%s1514_s0 + $0x68] sm:$0xff]  }
  0x24   :  { %v1174_v31 = vld [vmem:[%s1514_s0 + $0xe8] sm:$0xff]   ;;  %v1175_v32 = vld [vmem:[%s1514_s0 + $0x70] sm:$0xff]   ;;  %v1177_v34 = vld [vmem:[%s1514_s0 + $0x78] sm:$0xff]  }
  0x25   :  { %v1176_v33 = vld [vmem:[%s1514_s0 + $0xf0] sm:$0xff]   ;;  %v1178_v35 = vld [vmem:[%s1514_s0 + $0xf8] sm:$0xff]   ;;  %v1366_v36 = vld [vmem:[%s1516_s2] ss:$0 sm:$0xff]  ;;  %s1205_s0 = smov [#allocation2]  }
  0x26   :  { %1082 = vmatmul.mubr.msk.bf16.gmra.mrb[12].mxu0 %vm267_vm0, %v1161_v18  ;;  %1114 = vmatmul.mubr.msk.bf16.gmra.mrb[12].mxu1 %vm267_vm0, %v1162_v19  ;;  %s952_s2 = sshll.u32 %s1205_s0, 4  ;;  %s953_s2 = int_to_ptr.vmem [resolvable:$true] %s952_s2 }
  0x27   :  { %1085 = vmatprep.mubr.msk.bf16.mxu0 %vm267_vm0, %v1163_v20  ;;  %1117 = vmatprep.mubr.msk.bf16.mxu1 %vm267_vm0, %v1164_v21  ;;  %s1179_s27 = scalar_lea.vmem %s953_s2, 16  ;;  %s1183_s28 = scalar_lea.vmem %s953_s2, 32 }
  0x28   :  { %p1180_p0 = scmp.ne.s32.totalorder %s953_s2, %s1179_s27  ;;  %p1184_p1 = scmp.lt.s32.totalorder %s953_s2, %s953_s2 }
  0x29   :  { %p1185_p2 = scmp.lt.s32.totalorder %s1183_s28, %s1179_s27 }
  0x2b   :  { %p1186_p3 = por %p1185_p2, %p1184_p1 }
  0x2d   :  { %p1187_p4 = pnand %p1186_p3, %p1180_p0 }
  0x2e   :  { %1086 = vmatmul.mubr.msk.bf16.gmra.mrb[16].mxu0 %vm267_vm0, %v1165_v22  ;;  %1118 = vmatmul.mubr.msk.bf16.gmra.mrb[16].mxu1 %vm267_vm0, %v1166_v23 }
  0x2f   :  { %1089 = vmatprep.mubr.msk.bf16.mxu0 %vm267_vm0, %v1167_v24  ;;  %1121 = vmatprep.mubr.msk.bf16.mxu1 %vm267_vm0, %v1168_v25 }
  0x36   :  { %1090 = vmatmul.mubr.msk.bf16.gmra.mrb[20].mxu0 %vm267_vm0, %v1169_v26  ;;  %1122 = vmatmul.mubr.msk.bf16.gmra.mrb[20].mxu1 %vm267_vm0, %v1170_v27 }
  0x37   :  { %1093 = vmatprep.mubr.msk.bf16.mxu0 %vm267_vm0, %v1171_v28  ;;  %1125 = vmatprep.mubr.msk.bf16.mxu1 %vm267_vm0, %v1172_v29 }
  0x3e   :  { %1094 = vmatmul.mubr.msk.bf16.gmra.mrb[24].mxu0 %vm267_vm0, %v1173_v30  ;;  %1126 = vmatmul.mubr.msk.bf16.gmra.mrb[24].mxu1 %vm267_vm0, %v1174_v31 }
  0x3f   :  { %1097 = vmatprep.mubr.msk.bf16.mxu0 %vm267_vm0, %v1175_v32  ;;  %1129 = vmatprep.mubr.msk.bf16.mxu1 %vm267_vm0, %v1176_v33 }
  0x46   :  { %1098 = vmatmul.mubr.msk.bf16.gmra.mrb[28].mxu0 %vm267_vm0, %v1177_v34  ;;  %1130 = vmatmul.mubr.msk.bf16.gmra.mrb[28].mxu1 %vm267_vm0, %v1178_v35 }
  0xe1   :  { %v1071_v37 = vpop.f32.mrb[0].mxu0  ;;  %v1103_v38 = vpop.f32.mrb[0].mxu1 }
  0xe2   :  { %v411_v39 = vadd.f32 %v1071_v37, %v1366_v36  ;;  %v402_v40 = vpop.f32.mrb[1].mxu0  ;;  %v530_v41 = vpop.f32.mrb[1].mxu1  ;;  %v539_v42 = vadd.f32 %v1103_v38, %v1366_v36 }
  0xe3   :  { %v403_v43 = vadd.f32 %v1366_v36, %v402_v40  ;;  %v531_v44 = vadd.f32 %v1366_v36, %v530_v41  ;;  %v1072_v45 = vpop.f32.mrb[2].mxu0  ;;  %v1104_v46 = vpop.f32.mrb[2].mxu1 }
  0xe4   :  { %v414_v47 = vadd.f32 %v1072_v45, %v1366_v36  ;;  %v542_v48 = vadd.f32 %v1104_v46, %v1366_v36  ;;  %v405_v49 = vpop.f32.mrb[3].mxu0  ;;  %v533_v50 = vpop.f32.mrb[3].mxu1  ;;  %v659_v55 = vmax.f32 %v411_v39, 0.0  ;;  %v691_v56 = vmax.f32 %v539_v42, 0.0 }
  0xe5   :  { %v657_v51 = vmax.f32 %v403_v43, 0.0  ;;  %v689_v52 = vmax.f32 %v531_v44, 0.0  ;;  %v406_v53 = vadd.f32 %v1366_v36, %v405_v49  ;;  %v534_v54 = vadd.f32 %v1366_v36, %v533_v50 }
  0xe6   :  { %v660_v60 = vmax.f32 %v414_v47, 0.0  ;;  %v692_v62 = vmax.f32 %v542_v48, 0.0  ;;  %v725_v7 = vsel %vm721_vm2, %v659_v55, 0.0  ;;  %v794_v8 = vsel %vm721_vm2, %v691_v56, 0.0 }
  0xe7   :  { %v722_v57 = vsel %vm721_vm2, %v657_v51, 0.0  ;;  %v658_v58 = vmax.f32 %v406_v53, 0.0  ;;  %v690_v59 = vmax.f32 %v534_v54, 0.0  ;;  %v791_v61 = vsel %vm721_vm2, %v689_v52, 0.0 }
  0xe8   :  { %v727_v17 = vsel %vm721_vm2, %v660_v60, 0.0  ;;  %v796_v18 = vsel %vm721_vm2, %v692_v62, 0.0 }
  0xe9   :  { %v723_v63 = vsel %vm721_vm2, %v658_v58, 0.0  ;;  %v792_v0 = vsel %vm721_vm2, %v690_v59, 0.0  ;;  %v1075_v1 = vpop.f32.mrb[4].mxu0  ;;  %v1107_v2 = vpop.f32.mrb[4].mxu1 }
  0xea   :  { %v724_v3 = vadd.f32 %v723_v63, %v722_v57  ;;  %v793_v4 = vadd.f32 %v792_v0, %v791_v61  ;;  %v418_v5 = vpop.f32.mrb[5].mxu0  ;;  %v546_v6 = vpop.f32.mrb[5].mxu1  ;;  %v427_v21 = vadd.f32 %v1075_v1, %v1366_v36  ;;  %v555_v22 = vadd.f32 %v1107_v2, %v1366_v36 }
  0xeb   :  { %v419_v9 = vadd.f32 %v1366_v36, %v418_v5  ;;  %v547_v10 = vadd.f32 %v1366_v36, %v546_v6  ;;  %v1076_v11 = vpop.f32.mrb[6].mxu0  ;;  %v1108_v12 = vpop.f32.mrb[6].mxu1 }
  0xec   :  { %v726_v13 = vadd.f32 %v725_v7, %v724_v3  ;;  %v795_v14 = vadd.f32 %v794_v8, %v793_v4  ;;  %v421_v15 = vpop.f32.mrb[7].mxu0  ;;  %v549_v16 = vpop.f32.mrb[7].mxu1  ;;  %v430_v27 = vadd.f32 %v1076_v11, %v1366_v36  ;;  %v558_v28 = vadd.f32 %v1108_v12, %v1366_v36 }
  0xed   :  { %v661_v19 = vmax.f32 %v419_v9, 0.0  ;;  %v693_v20 = vmax.f32 %v547_v10, 0.0  ;;  %v422_v31 = vadd.f32 %v1366_v36, %v421_v15  ;;  %v550_v32 = vadd.f32 %v1366_v36, %v549_v16 }
  0xee   :  { %v728_v23 = vadd.f32 %v727_v17, %v726_v13  ;;  %v797_v24 = vadd.f32 %v796_v18, %v795_v14  ;;  %v663_v35 = vmax.f32 %v427_v21, 0.0  ;;  %v695_v37 = vmax.f32 %v555_v22, 0.0 }
  0xef   :  { %v729_v25 = vsel %vm721_vm2, %v661_v19, 0.0  ;;  %v798_v26 = vsel %vm721_vm2, %v693_v20, 0.0  ;;  %v662_v38 = vmax.f32 %v422_v31, 0.0  ;;  %v694_v39 = vmax.f32 %v550_v32, 0.0 }
  0xf0   :  { %v730_v29 = vadd.f32 %v729_v25, %v728_v23  ;;  %v799_v30 = vadd.f32 %v798_v26, %v797_v24  ;;  %v664_v42 = vmax.f32 %v430_v27, 0.0  ;;  %v696_v43 = vmax.f32 %v558_v28, 0.0 }
  0xf1   :  { %v1079_v33 = vpop.f32.mrb[8].mxu0  ;;  %v1111_v34 = vpop.f32.mrb[8].mxu1  ;;  %v731_v48 = vsel %vm721_vm2, %v662_v38, 0.0  ;;  %v800_v49 = vsel %vm721_vm2, %v694_v39, 0.0  ;;  %v733_v58 = vsel %vm721_vm2, %v663_v35, 0.0  ;;  %v802_v59 = vsel %vm721_vm2, %v695_v37, 0.0 }
  0xf2   :  { %v434_v40 = vpop.f32.mrb[9].mxu0  ;;  %v562_v41 = vpop.f32.mrb[9].mxu1  ;;  %v443_v50 = vadd.f32 %v1079_v33, %v1366_v36  ;;  %v571_v51 = vadd.f32 %v1111_v34, %v1366_v36  ;;  %v732_v54 = vadd.f32 %v731_v48, %v730_v29  ;;  %v801_v55 = vadd.f32 %v800_v49, %v799_v30 }
  0xf3   :  { %v435_v44 = vadd.f32 %v1366_v36, %v434_v40  ;;  %v563_v45 = vadd.f32 %v1366_v36, %v562_v41  ;;  %v1080_v46 = vpop.f32.mrb[10].mxu0  ;;  %v1112_v47 = vpop.f32.mrb[10].mxu1  ;;  %v735_v62 = vsel %vm721_vm2, %v664_v42, 0.0  ;;  %v804_v63 = vsel %vm721_vm2, %v696_v43, 0.0 }
  0xf4   :  { %v437_v52 = vpop.f32.mrb[11].mxu0  ;;  %v565_v53 = vpop.f32.mrb[11].mxu1  ;;  %v446_v60 = vadd.f32 %v1080_v46, %v1366_v36  ;;  %v574_v61 = vadd.f32 %v1112_v47, %v1366_v36  ;;  %v734_v0 = vadd.f32 %v733_v58, %v732_v54  ;;  %v803_v1 = vadd.f32 %v802_v59, %v801_v55 }
  0xf5   :  { %v665_v56 = vmax.f32 %v435_v44, 0.0  ;;  %v697_v57 = vmax.f32 %v563_v45, 0.0  ;;  %v438_v4 = vadd.f32 %v1366_v36, %v437_v52  ;;  %v566_v5 = vadd.f32 %v1366_v36, %v565_v53 }
  0xf6   :  { %v667_v6 = vmax.f32 %v443_v50, 0.0  ;;  %v699_v7 = vmax.f32 %v571_v51, 0.0  ;;  %v736_v8 = vadd.f32 %v735_v62, %v734_v0  ;;  %v805_v9 = vadd.f32 %v804_v63, %v803_v1 }
  0xf7   :  { %v737_v2 = vsel %vm721_vm2, %v665_v56, 0.0  ;;  %v806_v3 = vsel %vm721_vm2, %v697_v57, 0.0  ;;  %v668_v12 = vmax.f32 %v446_v60, 0.0  ;;  %v700_v13 = vmax.f32 %v574_v61, 0.0 }
  0xf8   :  { %v666_v14 = vmax.f32 %v438_v4, 0.0  ;;  %v698_v15 = vmax.f32 %v566_v5, 0.0  ;;  %v738_v18 = vadd.f32 %v737_v2, %v736_v8  ;;  %v807_v19 = vadd.f32 %v806_v3, %v805_v9 }
  0xf9   :  { %v1083_v10 = vpop.f32.mrb[12].mxu0  ;;  %v1115_v11 = vpop.f32.mrb[12].mxu1  ;;  %v741_v30 = vsel %vm721_vm2, %v667_v6, 0.0  ;;  %v810_v31 = vsel %vm721_vm2, %v699_v7, 0.0  ;;  %v743_v39 = vsel %vm721_vm2, %v668_v12, 0.0  ;;  %v812_v40 = vsel %vm721_vm2, %v700_v13, 0.0 }
  0xfa   :  { %v450_v16 = vpop.f32.mrb[13].mxu0  ;;  %v578_v17 = vpop.f32.mrb[13].mxu1  ;;  %v459_v20 = vadd.f32 %v1083_v10, %v1366_v36  ;;  %v587_v21 = vadd.f32 %v1115_v11, %v1366_v36  ;;  %v739_v24 = vsel %vm721_vm2, %v666_v14, 0.0  ;;  %v808_v25 = vsel %vm721_vm2, %v698_v15, 0.0 }
  0xfb   :  { %v1084_v22 = vpop.f32.mrb[14].mxu0  ;;  %v1116_v23 = vpop.f32.mrb[14].mxu1  ;;  %v451_v26 = vadd.f32 %v1366_v36, %v450_v16  ;;  %v579_v27 = vadd.f32 %v1366_v36, %v578_v17  ;;  %v740_v32 = vadd.f32 %v739_v24, %v738_v18  ;;  %v809_v33 = vadd.f32 %v808_v25, %v807_v19 }
  0xfc   :  { %v453_v28 = vpop.f32.mrb[15].mxu0  ;;  %v581_v29 = vpop.f32.mrb[15].mxu1  ;;  %v462_v37 = vadd.f32 %v1084_v22, %v1366_v36  ;;  %v590_v38 = vadd.f32 %v1116_v23, %v1366_v36  ;;  %v671_v43 = vmax.f32 %v459_v20, 0.0  ;;  %v703_v44 = vmax.f32 %v587_v21, 0.0 }
  0xfd   :  { %v669_v34 = vmax.f32 %v451_v26, 0.0  ;;  %v701_v35 = vmax.f32 %v579_v27, 0.0  ;;  %v742_v41 = vadd.f32 %v741_v30, %v740_v32  ;;  %v811_v42 = vadd.f32 %v810_v31, %v809_v33 }
  0xfe   :  { %v454_v49 = vadd.f32 %v1366_v36, %v453_v28  ;;  %v582_v50 = vadd.f32 %v1366_v36, %v581_v29  ;;  %v672_v53 = vmax.f32 %v462_v37, 0.0  ;;  %v704_v54 = vmax.f32 %v590_v38, 0.0 }
  0xff   :  { %v745_v45 = vsel %vm721_vm2, %v669_v34, 0.0  ;;  %v814_v46 = vsel %vm721_vm2, %v701_v35, 0.0  ;;  %v744_v47 = vadd.f32 %v743_v39, %v742_v41  ;;  %v813_v48 = vadd.f32 %v812_v40, %v811_v42 }
 0x100   :  { %v670_v61 = vmax.f32 %v454_v49, 0.0  ;;  %v702_v62 = vmax.f32 %v582_v50, 0.0  ;;  %v749_v1 = vsel %vm721_vm2, %v671_v43, 0.0  ;;  %v818_v2 = vsel %vm721_vm2, %v703_v44, 0.0 }
 0x101   :  { %v1087_v51 = vpop.f32.mrb[16].mxu0  ;;  %v1119_v52 = vpop.f32.mrb[16].mxu1  ;;  %v746_v59 = vadd.f32 %v745_v45, %v744_v47  ;;  %v815_v60 = vadd.f32 %v814_v46, %v813_v48  ;;  %v751_v11 = vsel %vm721_vm2, %v672_v53, 0.0  ;;  %v820_v12 = vsel %vm721_vm2, %v704_v54, 0.0 }
 0x102   :  { %v1427_v55 = vadd.f32 %v1087_v51, %v1366_v36  ;;  %v1430_v56 = vadd.f32 %v1119_v52, %v1366_v36  ;;  %v466_v57 = vpop.f32.mrb[17].mxu0  ;;  %v594_v58 = vpop.f32.mrb[17].mxu1  ;;  %v747_v7 = vsel %vm721_vm2, %v670_v61, 0.0  ;;  %v816_v8 = vsel %vm721_vm2, %v702_v62, 0.0 }
 0x103   :  { %v1088_v63 = vpop.f32.mrb[18].mxu0  ;;  %v1120_v0 = vpop.f32.mrb[18].mxu1  ;;  %v467_v3 = vadd.f32 %v1366_v36, %v466_v57  ;;  %v595_v4 = vadd.f32 %v1366_v36, %v594_v58  ;;  %v748_v13 = vadd.f32 %v747_v7, %v746_v59  ;;  %v817_v14 = vadd.f32 %v816_v8, %v815_v60 }
 0x104   :  { %v469_v5 = vpop.f32.mrb[19].mxu0  ;;  %v597_v6 = vpop.f32.mrb[19].mxu1  ;;  %v478_v9 = vadd.f32 %v1088_v63, %v1366_v36  ;;  %v606_v10 = vadd.f32 %v1120_v0, %v1366_v36  ;;  %v675_v15 = vmax.f32 %v1427_v55, 0.0  ;;  %v707_v16 = vmax.f32 %v1430_v56, 0.0 }
 0x105   :  { %v673_v17 = vmax.f32 %v467_v3, 0.0  ;;  %v705_v18 = vmax.f32 %v595_v4, 0.0  ;;  %v750_v19 = vadd.f32 %v749_v1, %v748_v13  ;;  %v819_v20 = vadd.f32 %v818_v2, %v817_v14 }
 0x106   :  { %v470_v21 = vadd.f32 %v1366_v36, %v469_v5  ;;  %v598_v22 = vadd.f32 %v1366_v36, %v597_v6  ;;  %v676_v25 = vmax.f32 %v478_v9, 0.0  ;;  %v708_v26 = vmax.f32 %v606_v10, 0.0 }
 0x107   :  { %v753_v23 = vsel %vm721_vm2, %v673_v17, 0.0  ;;  %v822_v24 = vsel %vm721_vm2, %v705_v18, 0.0  ;;  %v752_v29 = vadd.f32 %v751_v11, %v750_v19  ;;  %v821_v30 = vadd.f32 %v820_v12, %v819_v20 }
 0x108   :  { %v674_v31 = vmax.f32 %v470_v21, 0.0  ;;  %v706_v32 = vmax.f32 %v598_v22, 0.0  ;;  %v757_v54 = vsel %vm721_vm2, %v675_v15, 0.0  ;;  %v826_v55 = vsel %vm721_vm2, %v707_v16, 0.0 }
 0x109   :  { %v1091_v27 = vpop.f32.mrb[20].mxu0  ;;  %v1123_v28 = vpop.f32.mrb[20].mxu1  ;;  %v754_v42 = vadd.f32 %v753_v23, %v752_v29  ;;  %v823_v43 = vadd.f32 %v822_v24, %v821_v30  ;;  %v759_v56 = vsel %vm721_vm2, %v676_v25, 0.0  ;;  %v828_v57 = vsel %vm721_vm2, %v708_v26, 0.0 }
 0x10a   :  { %v482_v33 = vpop.f32.mrb[21].mxu0  ;;  %v610_v34 = vpop.f32.mrb[21].mxu1  ;;  %v491_v35 = vadd.f32 %v1091_v27, %v1366_v36  ;;  %v619_v37 = vadd.f32 %v1123_v28, %v1366_v36  ;;  %v755_v44 = vsel %vm721_vm2, %v674_v31, 0.0  ;;  %v824_v45 = vsel %vm721_vm2, %v706_v32, 0.0 }
 0x10b   :  { %v483_v38 = vadd.f32 %v1366_v36, %v482_v33  ;;  %v611_v39 = vadd.f32 %v1366_v36, %v610_v34  ;;  %v1092_v40 = vpop.f32.mrb[22].mxu0  ;;  %v1124_v41 = vpop.f32.mrb[22].mxu1  ;;  %v756_v50 = vadd.f32 %v755_v44, %v754_v42  ;;  %v825_v51 = vadd.f32 %v824_v45, %v823_v43 }
 0x10c   :  { %v485_v46 = vpop.f32.mrb[23].mxu0  ;;  %v613_v47 = vpop.f32.mrb[23].mxu1  ;;  %v494_v52 = vadd.f32 %v1092_v40, %v1366_v36  ;;  %v622_v53 = vadd.f32 %v1124_v41, %v1366_v36  ;;  %v679_v60 = vmax.f32 %v491_v35, 0.0  ;;  %v711_v61 = vmax.f32 %v619_v37, 0.0 }
 0x10d   :  { %v677_v48 = vmax.f32 %v483_v38, 0.0  ;;  %v709_v49 = vmax.f32 %v611_v39, 0.0  ;;  %v758_v58 = vadd.f32 %v757_v54, %v756_v50  ;;  %v827_v59 = vadd.f32 %v826_v55, %v825_v51 }
 0x10e   :  { %v486_v0 = vadd.f32 %v1366_v36, %v485_v46  ;;  %v614_v1 = vadd.f32 %v1366_v36, %v613_v47  ;;  %v680_v6 = vmax.f32 %v494_v52, 0.0  ;;  %v712_v7 = vmax.f32 %v622_v53, 0.0 }
 0x10f   :  { %v761_v62 = vsel %vm721_vm2, %v677_v48, 0.0  ;;  %v830_v63 = vsel %vm721_vm2, %v709_v49, 0.0  ;;  %v760_v4 = vadd.f32 %v759_v56, %v758_v58  ;;  %v829_v5 = vadd.f32 %v828_v57, %v827_v59 }
 0x110   :  { %v678_v10 = vmax.f32 %v486_v0, 0.0  ;;  %v710_v11 = vmax.f32 %v614_v1, 0.0  ;;  %v765_v22 = vsel %vm721_vm2, %v679_v60, 0.0  ;;  %v834_v23 = vsel %vm721_vm2, %v711_v61, 0.0 }
 0x111   :  { %v1095_v2 = vpop.f32.mrb[24].mxu0  ;;  %v1127_v3 = vpop.f32.mrb[24].mxu1  ;;  %v762_v16 = vadd.f32 %v761_v62, %v760_v4  ;;  %v831_v17 = vadd.f32 %v830_v63, %v829_v5  ;;  %v767_v30 = vsel %vm721_vm2, %v680_v6, 0.0  ;;  %v836_v31 = vsel %vm721_vm2, %v712_v7, 0.0 }
 0x112   :  { %v498_v8 = vpop.f32.mrb[25].mxu0  ;;  %v626_v9 = vpop.f32.mrb[25].mxu1  ;;  %v507_v12 = vadd.f32 %v1095_v2, %v1366_v36  ;;  %v635_v13 = vadd.f32 %v1127_v3, %v1366_v36  ;;  %v763_v24 = vsel %vm721_vm2, %v678_v10, 0.0  ;;  %v832_v25 = vsel %vm721_vm2, %v710_v11, 0.0 }
 0x113   :  { %v1096_v14 = vpop.f32.mrb[26].mxu0  ;;  %v1128_v15 = vpop.f32.mrb[26].mxu1  ;;  %v499_v18 = vadd.f32 %v1366_v36, %v498_v8  ;;  %v627_v19 = vadd.f32 %v1366_v36, %v626_v9  ;;  %v764_v26 = vadd.f32 %v763_v24, %v762_v16  ;;  %v833_v27 = vadd.f32 %v832_v25, %v831_v17 }
 0x114   :  { %v501_v20 = vpop.f32.mrb[27].mxu0  ;;  %v629_v21 = vpop.f32.mrb[27].mxu1  ;;  %v510_v32 = vadd.f32 %v1096_v14, %v1366_v36  ;;  %v638_v33 = vadd.f32 %v1128_v15, %v1366_v36  ;;  %v683_v37 = vmax.f32 %v507_v12, 0.0  ;;  %v715_v38 = vmax.f32 %v635_v13, 0.0 }
 0x115   :  { %v681_v28 = vmax.f32 %v499_v18, 0.0  ;;  %v713_v29 = vmax.f32 %v627_v19, 0.0  ;;  %v766_v34 = vadd.f32 %v765_v22, %v764_v26  ;;  %v835_v35 = vadd.f32 %v834_v23, %v833_v27 }
 0x116   :  { %v502_v41 = vadd.f32 %v1366_v36, %v501_v20  ;;  %v630_v42 = vadd.f32 %v1366_v36, %v629_v21  ;;  %v684_v49 = vmax.f32 %v510_v32, 0.0  ;;  %v716_v50 = vmax.f32 %v638_v33, 0.0 }
 0x117   :  { %v769_v39 = vsel %vm721_vm2, %v681_v28, 0.0  ;;  %v838_v40 = vsel %vm721_vm2, %v713_v29, 0.0  ;;  %v768_v45 = vadd.f32 %v767_v30, %v766_v34  ;;  %v837_v46 = vadd.f32 %v836_v31, %v835_v35 }
 0x118   :  { %v682_v51 = vmax.f32 %v502_v41, 0.0  ;;  %v714_v52 = vmax.f32 %v630_v42, 0.0  ;;  %v773_v55 = vsel %vm721_vm2, %v683_v37, 0.0  ;;  %v842_v56 = vsel %vm721_vm2, %v715_v38, 0.0 }
 0x119   :  { %v1099_v43 = vpop.f32.mrb[28].mxu0  ;;  %v1131_v44 = vpop.f32.mrb[28].mxu1  ;;  %v770_v57 = vadd.f32 %v769_v39, %v768_v45  ;;  %v839_v58 = vadd.f32 %v838_v40, %v837_v46  ;;  %v775_v5 = vsel %vm721_vm2, %v684_v49, 0.0  ;;  %v844_v6 = vsel %vm721_vm2, %v716_v50, 0.0 }
 0x11a   :  { %v514_v47 = vpop.f32.mrb[29].mxu0  ;;  %v642_v48 = vpop.f32.mrb[29].mxu1  ;;  %v771_v61 = vsel %vm721_vm2, %v682_v51, 0.0  ;;  %v840_v62 = vsel %vm721_vm2, %v714_v52, 0.0  ;;  %v523_v3 = vadd.f32 %v1099_v43, %v1366_v36  ;;  %v651_v4 = vadd.f32 %v1131_v44, %v1366_v36 }
 0x11b   :  { %v1100_v53 = vpop.f32.mrb[30].mxu0  ;;  %v1132_v54 = vpop.f32.mrb[30].mxu1  ;;  %v515_v63 = vadd.f32 %v1366_v36, %v514_v47  ;;  %v643_v0 = vadd.f32 %v1366_v36, %v642_v48  ;;  %v772_v1 = vadd.f32 %v771_v61, %v770_v57  ;;  %v841_v2 = vadd.f32 %v840_v62, %v839_v58 }
 0x11c   :  { %v517_v59 = vpop.f32.mrb[31].mxu0  ;;  %v645_v60 = vpop.f32.mrb[31].mxu1  ;;  %v526_v15 = vadd.f32 %v1100_v53, %v1366_v36  ;;  %v654_v16 = vadd.f32 %v1132_v54, %v1366_v36  ;;  %v687_v21 = vmax.f32 %v523_v3, 0.0  ;;  %v719_v22 = vmax.f32 %v651_v4, 0.0 }
 0x11d   :  { %v685_v7 = vmax.f32 %v515_v63, 0.0  ;;  %v717_v8 = vmax.f32 %v643_v0, 0.0  ;;  %v774_v9 = vadd.f32 %v773_v55, %v772_v1  ;;  %v843_v10 = vadd.f32 %v842_v56, %v841_v2 }
 0x11e   :  { %v518_v11 = vadd.f32 %v1366_v36, %v517_v59  ;;  %v646_v12 = vadd.f32 %v1366_v36, %v645_v60  ;;  %v688_v27 = vmax.f32 %v526_v15, 0.0  ;;  %v720_v28 = vmax.f32 %v654_v16, 0.0 }
 0x11f   :  { %v777_v13 = vsel %vm721_vm2, %v685_v7, 0.0  ;;  %v846_v14 = vsel %vm721_vm2, %v717_v8, 0.0  ;;  %v776_v17 = vadd.f32 %v775_v5, %v774_v9  ;;  %v845_v18 = vadd.f32 %v844_v6, %v843_v10 }
 0x120   :  { %v686_v19 = vmax.f32 %v518_v11, 0.0  ;;  %v718_v20 = vmax.f32 %v646_v12, 0.0  ;;  %v781_v31 = vsel %vm721_vm2, %v687_v21, 0.0  ;;  %v850_v36 = vsel %vm721_vm2, %v719_v22, 0.0 }
 0x121   :  { %v778_v23 = vadd.f32 %v777_v13, %v776_v17  ;;  %v847_v24 = vadd.f32 %v846_v14, %v845_v18  ;;  %v783_v34 = vsel %vm721_vm2, %v688_v27, 0.0  ;;  %v852_v35 = vsel %vm721_vm2, %v720_v28, 0.0 }
 0x122   :  { %v779_v25 = vsel %vm721_vm2, %v686_v19, 0.0  ;;  %v848_v26 = vsel %vm721_vm2, %v718_v20, 0.0  ;;  %v1203_v43 = vmov 1966171168   ;;  %v870_v46 = vlaneseq }
 0x123   :  { %v780_v29 = vadd.f32 %v779_v25, %v778_v23  ;;  %v849_v30 = vadd.f32 %v848_v26, %v847_v24  ;;  %v868_v44 = vunpack.c.l.s4 %v1203_v43  ;;  %v1204_v54 = vmov 1935823168  }
 0x124   :  { %v871_v52 = vshrl.u32 %v870_v46, 7  ;;  %v896_v55 = vunpack.c.l.s4 %v1204_v54 }
 0x125   :  { %v782_v32 = vadd.f32 %v781_v31, %v780_v29  ;;  %v851_v33 = vadd.f32 %v850_v36, %v849_v30  ;;  %v869_v50 = vunpack.c.0.s8 %v868_v44 }
 0x126   :  { %v897_v61 = vunpack.c.0.s8 %v896_v55 }
 0x127   :  { %v784_v37 = vadd.f32 %v783_v34, %v782_v32  ;;  %v853_v38 = vadd.f32 %v852_v35, %v851_v33  ;;  %v872_v59 = vsub.s32 %v869_v50, %v871_v52 }
 0x128   :  { %v900_v2 = vsub.s32 %v897_v61, %v871_v52 }
 0x129   :  { %v785_v39 = vrot.slane %v784_v37, 4  ;;  %v854_v40 = vrot.slane %v853_v38, 4 }
 0x12b   :  { %v786_v41 = vadd.f32 %v785_v39, %v784_v37  ;;  %v855_v42 = vadd.f32 %v854_v40, %v853_v38 }
 0x12d   :  { %v787_v45 = vrot.slane %v786_v41, 2  ;;  %v856_v47 = vrot.slane %v855_v42, 2 }
 0x12f   :  { %v788_v48 = vadd.f32 %v787_v45, %v786_v41  ;;  %v857_v49 = vadd.f32 %v856_v47, %v855_v42 }
 0x131   :  { %v789_v51 = vrot.slane %v788_v48, 1  ;;  %v858_v53 = vrot.slane %v857_v49, 1 }
 0x133   :  { %v790_v56 = vadd.f32 %v789_v51, %v788_v48  ;;  %v859_v57 = vadd.f32 %v858_v53, %v857_v49 }
 0x135   :  { %v861_v58 = vmul.f32 0.00390625, %v790_v56  ;;  %v862_v60 = vmul.f32 0.00390625, %v859_v57 }
 0x137   :  { %v863_v62 = vpack.c.bf16 %v861_v58, %v861_v58  ;;  %v864_v63 = vpack.c.bf16 %v862_v60, %v862_v60 }
 0x139   :  { %v873_v0 = vrot.slane %v863_v62, %v872_v59  ;;  %v887_v1 = vrot.slane %v864_v63, %v872_v59 }
 0x13b   :  { %v880_v3 = vrot.slane %v873_v0, %v872_v59  ;;  %v894_v4 = vrot.slane %v887_v1, %v872_v59 }
 0x13d   :  { %v901_v5 = vrot.slane %v880_v3, %v900_v2  ;;  %v915_v6 = vrot.slane %v894_v4, %v900_v2 }
 0x13f   :  { %v908_v7 = vrot.slane %v901_v5, %v900_v2  ;;  %v922_v8 = vrot.slane %v915_v6, %v900_v2 }
 0x141   :  { %v924_v9 = vunpack.c.l.b16 %v922_v8  ;;  %v923_v10 = vunpack.c.l.b16 %v908_v7 }
 0x143   :  { %v925_v11 = vrot.slane %v924_v9, 7 }
 0x145   :  { %v927_v12 = vsel %vm926_vm3, %v925_v11, %v923_v10 }
 0x146   :  { %v928_v13 = vpack.c.b16 %v927_v12, %v927_v12 }
 0x148   :  { %v935_v14 = vrot.slane %v928_v13, %v872_v59 }
 0x14a   :  { %v942_v15 = vrot.slane %v935_v14, %v872_v59 }
 0x14c   :  { %945 = vst.msk [vmem:[#allocation2] sm:$0x1] %vm944_vm4, %v942_v15 }
 0x14d   :  { %1190 = shalt.err (!%p1187_p4)
}
 0x14e   :  { %s1191_s4 = scalar_lea.hbm %s1517_s3, 16 }
 0x14f   :  { %p1192_p5 = scmp.ne.s32.totalorder %s1517_s3, %s1191_s4  ;;  %p1195_p6 = scmp.lt.u32.totalorder %s1191_s4, %s1517_s3 }
 0x151   :  { %p1197_p7 = pnand %p1195_p6, %p1192_p5 }
 0x153   :  { %1200 = shalt.err (!%p1197_p7)
}
 0x154   :  { %955 = dma.vmem_to_hbm [thread:$0]  %s953_s2, 16, %s1517_s3, [#allocation3]  }
 0x155   :  { %1201 = dma.done.wait [#allocation3], 16  }
 0x156   :  { %1202 = vsyncadd [#allocation3], 4294967280 }
 0x157   :  { %959 = vsyncpa [#allocation3], 1 }

</bundles_post_ra>
